<compile_context>
chip_gen: v7x
topology: tpu7x:2x2x1
jax: 0.10.0
libtpu: 0.0.40
codegen_flags: <defaults>
</compile_context>

<pallas_src>
import jax
import jax.numpy as jnp
from jax.experimental import pallas as pl
from jax.experimental.pallas import tpu as pltpu

_SUBLANE = 8
_MAX_BLOCK_BYTES = 8 * 1024 * 1024       # target per-block footprint
_MEGACORE_SPLIT_BYTES = 4 * 1024 * 1024  # force >=2 grid steps above this size


def _swish_kernel(x_ref, o_ref):
    x = x_ref[...]
    if x.dtype in (jnp.dtype(jnp.float32), jnp.dtype(jnp.bfloat16)):
        # Native-dtype compute: single EUP logistic pass, no extra casts.
        o_ref[...] = (x * jax.nn.sigmoid(x)).astype(o_ref.dtype)
    else:
        # Narrow / unusual float dtypes: compute in f32 for accuracy.
        xf = x.astype(jnp.float32)
        o_ref[...] = (xf * jax.nn.sigmoid(xf)).astype(o_ref.dtype)


def _vmem_capacity_bytes() -> int:
    """Best-effort VMEM query; conservative (v7x-sized) fallback."""
    try:
        cap = getattr(pltpu.get_tpu_info(), "vmem_capacity_bytes", None)
        if cap:
            return int(cap)
    except Exception:
        pass
    return 64 * 1024 * 1024


def _swish_2d(x2d: jax.Array, tr: int, vmem_limit: int, donate: bool) -> jax.Array:
    rows, cols = x2d.shape
    n = rows * cols
    itemsize = jnp.dtype(x2d.dtype).itemsize
    grid = (pl.cdiv(rows, tr),)  # partial last row-block is masked by Pallas
    return pl.pallas_call(
        _swish_kernel,
        out_shape=jax.ShapeDtypeStruct((rows, cols), x2d.dtype),
        grid_spec=pltpu.PrefetchScalarGridSpec(
            num_scalar_prefetch=0,
            grid=grid,
            in_specs=[pl.BlockSpec((tr, cols), lambda i: (i, 0))],
            out_specs=pl.BlockSpec((tr, cols), lambda i: (i, 0)),
        ),
        compiler_params=pltpu.CompilerParams(
            # Megacore/TC sharding of the row-block axis on multi-core chips.
            dimension_semantics=("parallel",),
            vmem_limit_bytes=vmem_limit,
        ),
        cost_estimate=pl.CostEstimate(
            flops=4 * n,
            transcendentals=n,
            bytes_accessed=2 * n * itemsize,
        ),
        input_output_aliases=({0: 0} if donate else {}),
    )(x2d)


def _run_flat(flat: jax.Array, n: int, block_target: int, vmem_limit: int,
              donate: bool) -> jax.Array:
    """Run the kernel on a flat slab whose length is a multiple of 128 (or <128)."""
    itemsize = jnp.dtype(flat.dtype).itemsize
    sub_align = _SUBLANE * max(1, 4 // itemsize)  # f32:8, bf16:16, 8-bit:32

    # Widest lane-dense cols (multiple of 128, <= 2048) dividing n, preferring
    # a choice that also yields at least one full sublane group of rows.
    cols = 0
    max_c = min(2048, n)
    for c in range(max_c - max_c % 128, 127, -128):
        if n % c == 0:
            if n // c >= sub_align:
                cols = c
                break
            if cols == 0:
                cols = c  # fallback: largest divisor even if few rows
    if cols == 0:
        cols = n  # n < 128: single full-dims block (legal: block == array dims)
    rows = n // cols

    bytes_per_row = cols * itemsize
    tr = block_target // bytes_per_row
    if tr >= rows:
        if n * itemsize >= _MEGACORE_SPLIT_BYTES and rows >= 2 * sub_align:
            # Big enough to matter: force >= 2 blocks so both v7x TCs stream.
            half = pl.cdiv(rows, 2)
            tr = ((half + sub_align - 1) // sub_align) * sub_align
        else:
            tr = rows
    else:
        tr = max(sub_align, (tr // sub_align) * sub_align)

    return _swish_2d(flat.reshape(rows, cols), tr, vmem_limit, donate)


def swish(x: jax.Array, *, donate_input: bool = False) -> jax.Array:
    """Elementwise Swish matching torch `x * x.sigmoid()` for float inputs."""
    dtype = x.dtype
    if not jnp.issubdtype(dtype, jnp.floating):
        raise TypeError(f"swish requires a floating dtype, got {dtype}")
    orig_shape = x.shape
    total = int(x.size)
    if total == 0:
        return x

    vmem_cap = _vmem_capacity_bytes()
    # 48 MiB scoped budget on v7x (64 MiB physical), 64 MiB on v5e/v6e (128 MiB).
    vmem_limit = int(min(vmem_cap * 3 // 4, 64 * 1024 * 1024))
    # 4 double-buffered block buffers (in + out) must fit with margin.
    block_target = int(min(_MAX_BLOCK_BYTES,
                           max(1024 * 1024, (vmem_limit - 4 * 1024 * 1024) // 4)))

    x_flat = x.reshape(-1)
    rem = total % 128

    if rem == 0 or total < 128:
        out_flat = _run_flat(x_flat, total, block_target, vmem_limit,
                             donate_input).reshape(-1)
    else:
        # Ragged: kernel over the 128-aligned prefix, tiny (<128-elem) tail in
        # plain JAX.
        # TODO(synk): a manual-DMA kernel (memory_space=pl.ANY + clamped pl.ds)
        # could write prefix and tail in place and drop the concatenate copy.
        main_len = total - rem
        head = _run_flat(x_flat[:main_len], main_len, block_target, vmem_limit,
                         False).reshape(-1)
        tail_f = x_flat[main_len:].astype(jnp.float32)
        tail = (tail_f * jax.nn.sigmoid(tail_f)).astype(dtype)
        out_flat = jnp.concatenate([head, tail])

    return out_flat.reshape(orig_shape)


if __name__ == "__main__":
    key = jax.random.PRNGKey(0)
    # NCHW conv feature map, consistent with the MET transformer blocks.
    x = jax.random.normal(key, (2, 4, 16, 16), dtype=jnp.float32)

    y = jax.block_until_ready(swish(x))
    y_ref = x * jax.nn.sigmoid(x)
    assert y.shape == x.shape and y.dtype == x.dtype
    assert jnp.allclose(y, y_ref, atol=2e-5, rtol=2e-5)

    # bf16 path (native bf16 compute inside the kernel).
    xb = x.astype(jnp.bfloat16)
    yb = jax.block_until_ready(swish(xb))
    yb_ref = xb * jax.nn.sigmoid(xb)
    assert yb.dtype == jnp.bfloat16
    assert jnp.allclose(yb.astype(jnp.float32), yb_ref.astype(jnp.float32),
                        atol=5e-2, rtol=5e-2)

    # Ragged flat size (4*5*13 = 260 elements): prefix kernel + plain-JAX tail.
    xr = jax.random.normal(jax.random.PRNGKey(0), (4, 5, 13), dtype=jnp.float32)
    yr = jax.block_until_ready(swish(xr))
    assert jnp.allclose(yr, xr * jax.nn.sigmoid(xr), atol=2e-5, rtol=2e-5)

    print("KERNEL_OK")
</pallas_src>

<mosaic_0001>
module attributes {stable_mosaic.version = 11 : i64} {
  func.func @_swish_kernel(%arg0: i32, %arg1: memref<8x256xf32, #tpu.memory_space<vmem>>, %arg2: memref<8x256xf32, #tpu.memory_space<vmem>>) attributes {dimension_semantics = [#tpu.dimension_semantics<parallel>], iteration_bounds = array<i64: 1>, scalar_prefetch = 0 : i64, scratch_operands = 0 : i64, tpu.core_type = #tpu.core_type<tc>, window_params = [{transform_indices = @transform_0, window_bounds = array<i64: 8, 256>}, {transform_indices = @transform_1, window_bounds = array<i64: 8, 256>}]} {
    %c0 = arith.constant 0 : index
    %c0_0 = arith.constant 0 : index
    %0 = vector.load %arg1[%c0, %c0_0] : memref<8x256xf32, #tpu.memory_space<vmem>>, vector<8x256xf32>
    %1 = arith.negf %0 : vector<8x256xf32>
    %2 = math.exp %1 : vector<8x256xf32>
    %cst = arith.constant 1.000000e+00 : f32
    %3 = vector.broadcast %cst : f32 to vector<8x256xf32>
    %4 = arith.addf %3, %2 : vector<8x256xf32>
    %5 = arith.divf %3, %4 : vector<8x256xf32>
    %6 = arith.mulf %0, %5 : vector<8x256xf32>
    %c0_1 = arith.constant 0 : index
    %c0_2 = arith.constant 0 : index
    %7 = vector.load %arg2[%c0_1, %c0_2] : memref<8x256xf32, #tpu.memory_space<vmem>>, vector<8x256xf32>
    tpu.vector_store %arg2[%c0_1, %c0_2], %6 {strides = array<i32>} : memref<8x256xf32, #tpu.memory_space<vmem>>, vector<8x256xf32>,
    return
  }
  func.func @transform_0(%arg0: i32) -> (i32, i32) {
    %c0_i32 = arith.constant 0 : i32
    %c0_i32_0 = arith.constant 0 : i32
    return %arg0, %c0_i32 : i32, i32
  }
  func.func @transform_1(%arg0: i32) -> (i32, i32) {
    %c0_i32 = arith.constant 0 : i32
    %c0_i32_0 = arith.constant 0 : i32
    return %arg0, %c0_i32 : i32, i32
  }
}

</mosaic_0001>

<bundles_post_ra>
// kernel: tpu_custom_call.1
= control target key start
LH: loop header
LB: loop body
LE: loop exit
PB: predicated region body
PF: predicated region fallthrough
CT: control target
= control target key end

     0   :  { %6 = vsyncpa [#allocation3], 0  ;;  %s150_s0 = inlined_call_operand.hbm [shape: f32[8,256], index: 0, kind: input, shape index: {}]   ;;  %s151_s1 = inlined_call_operand.hbm [shape: f32[8,256], index: 1, kind: output, shape index: {}]  }
   0x1   :  { %7 = vsyncpa [#allocation4], 0  ;;  %s114_s6 = smov [#allocation2]   ;;  %s66_s10 = scalar_lea.hbm %s150_s0, 256 }
   0x2   :  { %s14_s7 = sshll.u32 %s114_s6, 4  ;;  %p67_p0 = scmp.ne.s32.totalorder %s150_s0, %s66_s10  ;;  %s15_s7 = int_to_ptr.vmem [resolvable:$true] %s14_s7 }
   0x3   :  { %p70_p1 = scmp.lt.u32.totalorder %s66_s10, %s150_s0 }
   0x5   :  { %p72_p2 = pnand %p70_p1, %p67_p0 }
   0x7   :  { %75 = shalt.err (!%p72_p2)
}
   0x8   :  { %s76_s15 = scalar_lea.vmem %s15_s7, 256  ;;  %p81_p4 = scmp.lt.s32.totalorder %s15_s7, %s15_s7 }
   0x9   :  { %p77_p3 = scmp.ne.s32.totalorder %s15_s7, %s76_s15  ;;  %p82_p5 = scmp.lt.s32.totalorder %s76_s15, %s76_s15 }
   0xb   :  { %p83_p6 = por %p82_p5, %p81_p4 }
   0xd   :  { %p84_p7 = pnand %p83_p6, %p77_p3 }
   0xf   :  { %87 = shalt.err (!%p84_p7)
}
  0x10   :  { %17 = dma.hbm_to_vmem [thread:$0]  %s150_s0, 256, %s15_s7, [#allocation3]  }
  0x11   :  { %110 = dma.done.wait [#allocation3], 256  }
  0x12   :  { %111 = vsyncadd [#allocation3], 4294967040  ;;  %v21_v0 = vld [vmem:[#allocation2] sm:$0xff]  ;;  %v22_v1 = vld [vmem:[#allocation2 + $0x8] sm:$0xff]  ;;  %s115_s18 = smov [#allocation5]  }
  0x13   :  { %v54_v2 = vmul.f32 -1.442695, %v21_v0  ;;  %v55_v3 = vmul.f32 -1.442695, %v22_v1  ;;  %s45_s19 = sshll.u32 %s115_s18, 4  ;;  %s46_s19 = int_to_ptr.vmem [resolvable:$true] %s45_s19 }
  0x14   :  { %s88_s0 = scalar_lea.vmem %s46_s19, 256  ;;  %p93_p9 = scmp.lt.s32.totalorder %s46_s19, %s46_s19 }
  0x15   :  { %58 = vpow2.f32 %v54_v2  ;;  %p89_p8 = scmp.ne.s32.totalorder %s46_s19, %s88_s0  ;;  %p94_p10 = scmp.lt.s32.totalorder %s88_s0, %s88_s0 }
  0x16   :  { %60 = vpow2.f32 %v55_v3 }
  0x17   :  { %p95_p11 = por %p94_p10, %p93_p9 }
  0x19   :  { %p96_p12 = pnand %p95_p11, %p89_p8 }
  0x1f   :  { %v59_v4 = vpop.eup %58 }
  0x20   :  { %v61_v5 = vpop.eup %60  ;;  %v29_v6 = vadd.f32 1.0, %v59_v4 }
  0x21   :  { %v30_v7 = vadd.f32 1.0, %v61_v5 }
  0x22   :  { %62 = vrcp.f32 %v29_v6 }
  0x23   :  { %64 = vrcp.f32 %v30_v7 }
  0x2c   :  { %v63_v8 = vpop.eup %62 }
  0x2d   :  { %v65_v9 = vpop.eup %64  ;;  %v35_v10 = vmul.f32 %v63_v8, %v21_v0 }
  0x2e   :  { %v36_v11 = vmul.f32 %v65_v9, %v22_v1 }
  0x2f   :  { %37 = vst [vmem:[#allocation5] sm:$0xff] %v35_v10 }
  0x30   :  { %38 = vst [vmem:[#allocation5 + $0x8] sm:$0xff] %v36_v11 }
  0x31   :  { %99 = shalt.err (!%p96_p12)
}
  0x32   :  { %s100_s22 = scalar_lea.hbm %s151_s1, 256 }
  0x33   :  { %p101_p13 = scmp.ne.s32.totalorder %s151_s1, %s100_s22  ;;  %p104_p0 = scmp.lt.u32.totalorder %s100_s22, %s151_s1 }
  0x35   :  { %p106_p1 = pnand %p104_p0, %p101_p13 }
  0x37   :  { %109 = shalt.err (!%p106_p1)
}
  0x38   :  { %48 = dma.vmem_to_hbm [thread:$0]  %s46_s19, 256, %s151_s1, [#allocation4]  }
  0x39   :  { %112 = dma.done.wait [#allocation4], 256  }
  0x3a   :  { %113 = vsyncadd [#allocation4], 4294967040 }
  0x3b   :  { %52 = vsyncpa [#allocation3], 1 }
  0x3c   :  { %53 = vsyncpa [#allocation4], 1 }

</bundles_post_ra>
